<compile_context>
chip_gen: v7x
topology: tpu7x:2x2x1
jax: 0.10.0
libtpu: 0.0.40
codegen_flags: <defaults>
</compile_context>

<pallas_src>
import jax
import jax.numpy as jnp
from jax.experimental import pallas as pl
from jax.experimental.pallas import tpu as pltpu

NEG_SLOPE = 0.01                 # PyTorch nn.LeakyReLU default
_VMEM_LIMIT = 32 * 1024 * 1024   # comfortable on v5e/v6e/v7x for block_batch=8192


def _leaky(x):
    return jnp.where(x > 0, x, NEG_SLOPE * x)


def _round8(n):
    return ((n + 7) // 8) * 8


# ------------------------------------------------------------------ host-side weight prep
def _prep_weights(p):
    """Fold the linear front end into one (ZP + 2*HP, z+u+y) matrix applied to [z; u; y].

    Row segments (padded to multiples of 8 for aligned in-kernel slicing):
      [0      : z_dim ]  z_nominal = A z + B u
      [ZP     : ZP+h0 ]  Le_pre    = (W1z - W1e C) z + W1e y + b1
      [ZP+HP  : +h0   ]  L0_pre    = W1z z + (b1 + W1e zero_obs_error)
    """
    f32 = jnp.float32
    A = p["A"].astype(f32); Bm = p["B"].astype(f32); C = p["C"].astype(f32)
    W1 = p["W1"].astype(f32); b1 = p["b1"].astype(f32)
    W2 = p["W2"].astype(f32); b2 = p["b2"].astype(f32)
    W3 = p["W3"].astype(f32); b3 = p["b3"].astype(f32)
    W4 = p["W4"].astype(f32); b4 = p["b4"].astype(f32)
    zoe = p["zero_obs_error"].astype(f32)                  # (1, y_dim)

    z_dim, u_dim, y_dim = A.shape[0], Bm.shape[1], C.shape[0]
    h0 = W1.shape[0]
    ZP, HP = _round8(z_dim), _round8(h0)
    W1z, W1e = W1[:, :z_dim], W1[:, z_dim:]

    wf = jnp.zeros((ZP + 2 * HP, z_dim + u_dim + y_dim), f32)
    wf = wf.at[:z_dim, :z_dim].set(A)
    wf = wf.at[:z_dim, z_dim:z_dim + u_dim].set(Bm)
    wf = wf.at[ZP:ZP + h0, :z_dim].set(W1z - W1e @ C)
    wf = wf.at[ZP:ZP + h0, z_dim + u_dim:].set(W1e)
    wf = wf.at[ZP + HP:ZP + HP + h0, :z_dim].set(W1z)

    bf = jnp.zeros((ZP + 2 * HP, 1), f32)
    bf = bf.at[ZP:ZP + h0, 0].set(b1)
    bf = bf.at[ZP + HP:ZP + HP + h0, 0].set(b1 + W1e @ zoe[0])

    # Pad W2's input dim so zero pre-activation padding rows feed zero columns.
    W2p = jnp.zeros((W2.shape[0], HP), f32).at[:, :h0].set(W2)

    dims = dict(z_dim=z_dim, u_dim=u_dim, y_dim=y_dim, ZP=ZP, HP=HP)
    tail = (W2p, b2[:, None], W3, b3[:, None], W4, b4[:, None])
    return wf, bf, tail, dims


# ------------------------------------------------------------------------------- kernels
def _tail_mlp(hcat, w2, b2, w3, b3, w4, b4):
    f32 = jnp.float32
    h = _leaky(hcat)
    h = _leaky(jnp.dot(w2, h, preferred_element_type=f32) + b2)
    h = _leaky(jnp.dot(w3, h, preferred_element_type=f32) + b3)
    return jnp.dot(w4, h, preferred_element_type=f32) + b4


def _make_forward_kernel(z_dim, ZP, HP):
    def kernel(x_ref, wf_ref, bf_ref, w2_ref, b2_ref, w3_ref, b3_ref, w4_ref,
               b4_ref, out_ref):
        f32 = jnp.float32
        x = x_ref[...]                       # (z+u+y, tb)  lane dim = batch
        tb = x.shape[1]
        # One fused MXU dot produces z_nominal / Le_pre / L0_pre at once.
        front = jnp.dot(wf_ref[...], x, preferred_element_type=f32) + bf_ref[...]
        # Shared tail, run once on the lane-stacked Le / L0 pre-activations.
        hcat = jnp.concatenate([front[ZP:ZP + HP], front[ZP + HP:]], axis=1)
        tl = _tail_mlp(hcat, w2_ref[...], b2_ref[...], w3_ref[...], b3_ref[...],
                       w4_ref[...], b4_ref[...])
        out = front[:z_dim] + tl[:, :tb] - tl[:, tb:]
        out_ref[...] = out.astype(out_ref.dtype)
    return kernel


def _make_rollout_kernel(z_dim, ZP, HP):
    def kernel(z0_ref, uy_ref, wfz_ref, wfuy_ref, bf_ref,
               w2_ref, b2_ref, w3_ref, b3_ref, w4_ref, b4_ref,
               zout_ref, zstate):
        f32 = jnp.float32
        t = pl.program_id(1)

        @pl.when(t == 0)
        def _():
            zstate[...] = z0_ref[...].astype(f32)

        zc = zstate[...]                     # (z_dim, tb)
        tb = zc.shape[1]
        front = (jnp.dot(wfz_ref[...], zc, preferred_element_type=f32)
                 + jnp.dot(wfuy_ref[...], uy_ref[...], preferred_element_type=f32)
                 + bf_ref[...])
        hcat = jnp.concatenate([front[ZP:ZP + HP], front[ZP + HP:]], axis=1)
        tl = _tail_mlp(hcat, w2_ref[...], b2_ref[...], w3_ref[...], b3_ref[...],
                       w4_ref[...], b4_ref[...])
        z_next = front[:z_dim] + tl[:, :tb] - tl[:, tb:]
        zstate[...] = z_next
        zout_ref[...] = z_next.astype(zout_ref.dtype)
    return kernel


# ------------------------------------------------------------------------------ wrappers
def _batch_tile(B, block_batch):
    if B <= block_batch:
        return B
    return max(128, (block_batch // 128) * 128)   # lane-aligned batch tile


def luenberger_observer_forward(z, u, y, params, block_batch=8192):
    """Single observer step. Inputs (B, d) batch-major; returns (B, z_dim)."""
    B = z.shape[0]
    wf, bf, tail, dims = _prep_weights(params)
    z_dim = dims["z_dim"]

    # One packed, lane-dense (feature, batch) input stream.
    x = jnp.concatenate([z, u, y], axis=1).T.astype(jnp.float32)   # (z+u+y, B)

    tb = _batch_tile(B, block_batch)
    grid = (pl.cdiv(B, tb),)                 # ragged last block handled by Pallas

    weights = (wf, bf) + tail

    def resident(w):                         # constant index map -> stays VMEM resident
        return pl.BlockSpec(w.shape, lambda i: (0, 0))

    out = pl.pallas_call(
        _make_forward_kernel(z_dim, dims["ZP"], dims["HP"]),
        out_shape=jax.ShapeDtypeStruct((z_dim, B), z.dtype),
        grid=grid,
        in_specs=[pl.BlockSpec((x.shape[0], tb), lambda i: (0, i))]
                 + [resident(w) for w in weights],
        out_specs=pl.BlockSpec((z_dim, tb), lambda i: (0, i)),
        compiler_params=pltpu.CompilerParams(
            dimension_semantics=("parallel",),
            vmem_limit_bytes=_VMEM_LIMIT),
    )(x, *weights)
    return out.T


def luenberger_observer_rollout(z0, u_seq, y_seq, params, block_batch=8192):
    """Fused rollout z[t+1] = step(z[t], u[t], y[t]) in a single pallas_call.

    z0: (B, z_dim); u_seq: (T, B, u_dim); y_seq: (T, B, y_dim).
    Returns (T, B, z_dim) with the estimates z[1..T].
    """
    T, B, u_dim = u_seq.shape
    y_dim = y_seq.shape[2]
    wf, bf, tail, dims = _prep_weights(params)
    z_dim, ZP, HP = dims["z_dim"], dims["ZP"], dims["HP"]

    wfz, wfuy = wf[:, :z_dim], wf[:, z_dim:]          # split front matrix: state vs. stream

    z0t = z0.T.astype(jnp.float32)                                      # (z_dim, B)
    uy = jnp.transpose(jnp.concatenate([u_seq, y_seq], axis=2),
                       (0, 2, 1)).astype(jnp.float32)                   # (T, u+y, B)

    tb = _batch_tile(B, block_batch)
    nb = pl.cdiv(B, tb)

    weights = (wfz, wfuy, bf) + tail

    def resident(w):
        return pl.BlockSpec(w.shape, lambda b, t: (0, 0))

    out = pl.pallas_call(
        _make_rollout_kernel(z_dim, ZP, HP),
        out_shape=jax.ShapeDtypeStruct((T, z_dim, B), z0.dtype),
        grid=(nb, T),                                 # time innermost; batch parallel
        in_specs=[pl.BlockSpec((z_dim, tb), lambda b, t: (0, b)),
                  pl.BlockSpec((pl.Squeezed(), u_dim + y_dim, tb),
                               lambda b, t: (t, 0, b))]
                 + [resident(w) for w in weights],
        out_specs=pl.BlockSpec((pl.Squeezed(), z_dim, tb), lambda b, t: (t, 0, b)),
        scratch_shapes=[pltpu.VMEM((z_dim, tb), jnp.float32)],
        compiler_params=pltpu.CompilerParams(
            dimension_semantics=("parallel", "arbitrary"),
            vmem_limit_bytes=_VMEM_LIMIT),
    )(z0t, uy, *weights)
    return jnp.transpose(out, (0, 2, 1))              # (T, B, z_dim)


# --------------------------------------------------------------------------- params / ref
def build_params(key, z_dim, u_dim, y_dim, fc_hidden_dim=(16, 16, 8, 8)):
    """Deterministic synthetic parameters, PyTorch (out, in) orientation."""
    ks = jax.random.split(key, 12)
    scale = 0.3

    def rnd(k, shape):
        return (scale * jax.random.normal(k, shape)).astype(jnp.float32)

    h0, h1, h2 = fc_hidden_dim[0], fc_hidden_dim[1], fc_hidden_dim[2]
    # Per the PyTorch __init__ loop, fc_hidden_dim[3] is unused; last Linear maps h2 -> z.
    return {
        "A": rnd(ks[0], (z_dim, z_dim)),
        "B": rnd(ks[1], (z_dim, u_dim)),
        "C": rnd(ks[2], (y_dim, z_dim)),
        "W1": rnd(ks[3], (h0, z_dim + y_dim)), "b1": rnd(ks[4], (h0,)),
        "W2": rnd(ks[5], (h1, h0)),            "b2": rnd(ks[6], (h1,)),
        "W3": rnd(ks[7], (h2, h1)),            "b3": rnd(ks[8], (h2,)),
        "W4": rnd(ks[9], (z_dim, h2)),         "b4": rnd(ks[10], (z_dim,)),
        "zero_obs_error": rnd(ks[11], (1, y_dim)),
    }


def reference_forward(z, u, y, p):
    """Plain-JAX mirror of the PyTorch forward (concat-based, no algebraic folding)."""
    def fc(x):
        h = _leaky(x @ p["W1"].T + p["b1"])
        h = _leaky(h @ p["W2"].T + p["b2"])
        h = _leaky(h @ p["W3"].T + p["b3"])
        return h @ p["W4"].T + p["b4"]

    z_nominal = z @ p["A"].T + u @ p["B"].T
    obs_error = y - z @ p["C"].T
    K = jnp.ones((z.shape[0], 1), z.dtype)
    Le = fc(jnp.concatenate([z, obs_error], axis=1))
    L0 = fc(jnp.concatenate([z, K * p["zero_obs_error"]], axis=1))
    return z_nominal + Le - L0


if __name__ == "__main__":
    z_dim, u_dim, y_dim = 4, 2, 3
    key = jax.random.PRNGKey(0)
    kz, ku, ky, kp, k2 = jax.random.split(key, 5)
    params = build_params(kp, z_dim, u_dim, y_dim)

    # 1) Single step, small batch (single grid step).
    B = 8
    z = jax.random.normal(kz, (B, z_dim), dtype=jnp.float32)
    u = jax.random.normal(ku, (B, u_dim), dtype=jnp.float32)
    y = jax.random.normal(ky, (B, y_dim), dtype=jnp.float32)
    out = jax.block_until_ready(luenberger_observer_forward(z, u, y, params))
    ref = reference_forward(z, u, y, params)
    assert out.shape == (B, z_dim)
    assert jnp.allclose(out, ref, rtol=1e-4, atol=1e-4), "single-step mismatch"

    # 2) Single step with a batch grid and a ragged (unpadded) last block.
    B2 = 200
    kz2, ku2, ky2 = jax.random.split(k2, 3)
    z2 = jax.random.normal(kz2, (B2, z_dim), dtype=jnp.float32)
    u2 = jax.random.normal(ku2, (B2, u_dim), dtype=jnp.float32)
    y2 = jax.random.normal(ky2, (B2, y_dim), dtype=jnp.float32)
    out2 = jax.block_until_ready(
        luenberger_observer_forward(z2, u2, y2, params, block_batch=128))
    ref2 = reference_forward(z2, u2, y2, params)
    assert out2.shape == (B2, z_dim)
    assert jnp.allclose(out2, ref2, rtol=1e-4, atol=1e-4), "tiled-batch mismatch"

    # 3) Fused time-recurrence rollout (one pallas_call for all T steps).
    T = 6
    ku3, ky3 = jax.random.split(jax.random.PRNGKey(1), 2)
    u_seq = jax.random.normal(ku3, (T, B, u_dim), dtype=jnp.float32)
    y_seq = jax.random.normal(ky3, (T, B, y_dim), dtype=jnp.float32)
    z_seq = jax.block_until_ready(luenberger_observer_rollout(z, u_seq, y_seq, params))
    zr = z
    for t in range(T):
        zr = reference_forward(zr, u_seq[t], y_seq[t], params)
        assert jnp.allclose(z_seq[t], zr, rtol=2e-4, atol=2e-4), f"rollout mismatch at t={t}"

    # 4) Rollout with a tiled (ragged) batch axis -> grid (2, T), batch axis "parallel".
    T2 = 3
    ku4, ky4 = jax.random.split(jax.random.PRNGKey(2), 2)
    u_seq2 = jax.random.normal(ku4, (T2, B2, u_dim), dtype=jnp.float32)
    y_seq2 = jax.random.normal(ky4, (T2, B2, y_dim), dtype=jnp.float32)
    z_seq2 = jax.block_until_ready(
        luenberger_observer_rollout(z2, u_seq2, y_seq2, params, block_batch=128))
    zr2 = z2
    for t in range(T2):
        zr2 = reference_forward(zr2, u_seq2[t], y_seq2[t], params)
        assert jnp.allclose(z_seq2[t], zr2, rtol=2e-4, atol=2e-4), \
            f"tiled rollout mismatch at t={t}"

    print("KERNEL_OK")
</pallas_src>

<mosaic_0001>
module attributes {stable_mosaic.version = 11 : i64} {
  func.func @kernel(%arg0: i32, %arg1: memref<9x8xf32, #tpu.memory_space<vmem>>, %arg2: memref<40x9xf32, #tpu.memory_space<vmem>>, %arg3: memref<40x1xf32, #tpu.memory_space<vmem>>, %arg4: memref<16x16xf32, #tpu.memory_space<vmem>>, %arg5: memref<16x1xf32, #tpu.memory_space<vmem>>, %arg6: memref<8x16xf32, #tpu.memory_space<vmem>>, %arg7: memref<8x1xf32, #tpu.memory_space<vmem>>, %arg8: memref<4x8xf32, #tpu.memory_space<vmem>>, %arg9: memref<4x1xf32, #tpu.memory_space<vmem>>, %arg10: memref<4x8xf32, #tpu.memory_space<vmem>>) attributes {dimension_semantics = [#tpu.dimension_semantics<parallel>], iteration_bounds = array<i64: 1>, scalar_prefetch = 0 : i64, scratch_operands = 0 : i64, tpu.core_type = #tpu.core_type<tc>, window_params = [{transform_indices = @transform_0, window_bounds = array<i64: 9, 8>}, {pipeline_mode = #tpu.pipeline_mode<synchronous>, transform_indices = @transform_1, window_bounds = array<i64: 40, 9>}, {pipeline_mode = #tpu.pipeline_mode<synchronous>, transform_indices = @transform_2, window_bounds = array<i64: 40, 1>}, {pipeline_mode = #tpu.pipeline_mode<synchronous>, transform_indices = @transform_3, window_bounds = array<i64: 16, 16>}, {pipeline_mode = #tpu.pipeline_mode<synchronous>, transform_indices = @transform_4, window_bounds = array<i64: 16, 1>}, {pipeline_mode = #tpu.pipeline_mode<synchronous>, transform_indices = @transform_5, window_bounds = array<i64: 8, 16>}, {pipeline_mode = #tpu.pipeline_mode<synchronous>, transform_indices = @transform_6, window_bounds = array<i64: 8, 1>}, {pipeline_mode = #tpu.pipeline_mode<synchronous>, transform_indices = @transform_7, window_bounds = array<i64: 4, 8>}, {pipeline_mode = #tpu.pipeline_mode<synchronous>, transform_indices = @transform_8, window_bounds = array<i64: 4, 1>}, {transform_indices = @transform_9, window_bounds = array<i64: 4, 8>}]} {
    %c0 = arith.constant 0 : index
    %c0_0 = arith.constant 0 : index
    %0 = vector.load %arg1[%c0, %c0_0] : memref<9x8xf32, #tpu.memory_space<vmem>>, vector<9x8xf32>
    %c0_1 = arith.constant 0 : index
    %c0_2 = arith.constant 0 : index
    %1 = vector.load %arg2[%c0_1, %c0_2] : memref<40x9xf32, #tpu.memory_space<vmem>>, vector<40x9xf32>
    %cst = arith.constant dense<0.000000e+00> : vector<40x8xf32>
    %2 = tpu.matmul %1, %0, %cst {dimension_numbers = #tpu.dot_dimension_numbers<[1], [0], [0], [1], [0, 0, 1, 1], [], []>} : vector<40x9xf32>, vector<9x8xf32>, vector<40x8xf32> -> vector<40x8xf32>
    %c0_3 = arith.constant 0 : index
    %c0_4 = arith.constant 0 : index
    %3 = vector.load %arg3[%c0_3, %c0_4] : memref<40x1xf32, #tpu.memory_space<vmem>>, vector<40x1xf32>
    %4 = vector.broadcast %3 : vector<40x1xf32> to vector<40x8xf32>
    %5 = arith.addf %2, %4 : vector<40x8xf32>
    %6 = vector.extract_strided_slice %5 {offsets = [8, 0], sizes = [16, 8], strides = [1, 1]} : vector<40x8xf32> to vector<16x8xf32>
    %7 = vector.extract_strided_slice %5 {offsets = [24, 0], sizes = [16, 8], strides = [1, 1]} : vector<40x8xf32> to vector<16x8xf32>
    %8 = tpu.concatenate %6, %7 in 1 : vector<16x8xf32>, vector<16x8xf32> -> vector<16x16xf32>
    %c0_5 = arith.constant 0 : index
    %c0_6 = arith.constant 0 : index
    %9 = vector.load %arg4[%c0_5, %c0_6] : memref<16x16xf32, #tpu.memory_space<vmem>>, vector<16x16xf32>
    %c0_7 = arith.constant 0 : index
    %c0_8 = arith.constant 0 : index
    %10 = vector.load %arg5[%c0_7, %c0_8] : memref<16x1xf32, #tpu.memory_space<vmem>>, vector<16x1xf32>
    %c0_9 = arith.constant 0 : index
    %c0_10 = arith.constant 0 : index
    %11 = vector.load %arg6[%c0_9, %c0_10] : memref<8x16xf32, #tpu.memory_space<vmem>>, vector<8x16xf32>
    %c0_11 = arith.constant 0 : index
    %c0_12 = arith.constant 0 : index
    %12 = vector.load %arg7[%c0_11, %c0_12] : memref<8x1xf32, #tpu.memory_space<vmem>>, vector<8x1xf32>
    %c0_13 = arith.constant 0 : index
    %c0_14 = arith.constant 0 : index
    %13 = vector.load %arg8[%c0_13, %c0_14] : memref<4x8xf32, #tpu.memory_space<vmem>>, vector<4x8xf32>
    %c0_15 = arith.constant 0 : index
    %c0_16 = arith.constant 0 : index
    %14 = vector.load %arg9[%c0_15, %c0_16] : memref<4x1xf32, #tpu.memory_space<vmem>>, vector<4x1xf32>
    %cst_17 = arith.constant 0.000000e+00 : f32
    %15 = vector.broadcast %cst_17 : f32 to vector<16x16xf32>
    %16 = arith.cmpf ogt, %8, %15 : vector<16x16xf32>
    %cst_18 = arith.constant 0.00999999977 : f32
    %17 = vector.broadcast %cst_18 : f32 to vector<16x16xf32>
    %18 = arith.mulf %17, %8 : vector<16x16xf32>
    %19 = arith.select %16, %8, %18 : vector<16x16xi1>, vector<16x16xf32>
    %cst_19 = arith.constant dense<0.000000e+00> : vector<16x16xf32>
    %20 = tpu.matmul %9, %19, %cst_19 {dimension_numbers = #tpu.dot_dimension_numbers<[1], [0], [0], [1], [0, 0, 1, 1], [], []>} : vector<16x16xf32>, vector<16x16xf32>, vector<16x16xf32> -> vector<16x16xf32>
    %21 = vector.broadcast %10 : vector<16x1xf32> to vector<16x16xf32>
    %22 = arith.addf %20, %21 : vector<16x16xf32>
    %cst_20 = arith.constant 0.000000e+00 : f32
    %23 = vector.broadcast %cst_20 : f32 to vector<16x16xf32>
    %24 = arith.cmpf ogt, %22, %23 : vector<16x16xf32>
    %cst_21 = arith.constant 0.00999999977 : f32
    %25 = vector.broadcast %cst_21 : f32 to vector<16x16xf32>
    %26 = arith.mulf %25, %22 : vector<16x16xf32>
    %27 = arith.select %24, %22, %26 : vector<16x16xi1>, vector<16x16xf32>
    %cst_22 = arith.constant dense<0.000000e+00> : vector<8x16xf32>
    %28 = tpu.matmul %11, %27, %cst_22 {dimension_numbers = #tpu.dot_dimension_numbers<[1], [0], [0], [1], [0, 0, 1, 1], [], []>} : vector<8x16xf32>, vector<16x16xf32>, vector<8x16xf32> -> vector<8x16xf32>
    %29 = vector.broadcast %12 : vector<8x1xf32> to vector<8x16xf32>
    %30 = arith.addf %28, %29 : vector<8x16xf32>
    %cst_23 = arith.constant 0.000000e+00 : f32
    %31 = vector.broadcast %cst_23 : f32 to vector<8x16xf32>
    %32 = arith.cmpf ogt, %30, %31 : vector<8x16xf32>
    %cst_24 = arith.constant 0.00999999977 : f32
    %33 = vector.broadcast %cst_24 : f32 to vector<8x16xf32>
    %34 = arith.mulf %33, %30 : vector<8x16xf32>
    %35 = arith.select %32, %30, %34 : vector<8x16xi1>, vector<8x16xf32>
    %cst_25 = arith.constant dense<0.000000e+00> : vector<4x16xf32>
    %36 = tpu.matmul %13, %35, %cst_25 {dimension_numbers = #tpu.dot_dimension_numbers<[1], [0], [0], [1], [0, 0, 1, 1], [], []>} : vector<4x8xf32>, vector<8x16xf32>, vector<4x16xf32> -> vector<4x16xf32>
    %37 = vector.broadcast %14 : vector<4x1xf32> to vector<4x16xf32>
    %38 = arith.addf %36, %37 : vector<4x16xf32>
    %39 = vector.extract_strided_slice %5 {offsets = [0, 0], sizes = [4, 8], strides = [1, 1]} : vector<40x8xf32> to vector<4x8xf32>
    %40 = vector.extract_strided_slice %38 {offsets = [0, 0], sizes = [4, 8], strides = [1, 1]} : vector<4x16xf32> to vector<4x8xf32>
    %41 = arith.addf %39, %40 : vector<4x8xf32>
    %42 = vector.extract_strided_slice %38 {offsets = [0, 8], sizes = [4, 8], strides = [1, 1]} : vector<4x16xf32> to vector<4x8xf32>
    %43 = arith.subf %41, %42 : vector<4x8xf32>
    %c0_26 = arith.constant 0 : index
    %c0_27 = arith.constant 0 : index
    %44 = vector.load %arg10[%c0_26, %c0_27] : memref<4x8xf32, #tpu.memory_space<vmem>>, vector<4x8xf32>
    tpu.vector_store %arg10[%c0_26, %c0_27], %43 {strides = array<i32>} : memref<4x8xf32, #tpu.memory_space<vmem>>, vector<4x8xf32>,
    return
  }
  func.func @transform_0(%arg0: i32) -> (i32, i32) {
    %c0_i32 = arith.constant 0 : i32
    %c0_i32_0 = arith.constant 0 : i32
    return %c0_i32, %arg0 : i32, i32
  }
  func.func @transform_1(%arg0: i32) -> (i32, i32) {
    %c0_i32 = arith.constant 0 : i32
    %c0_i32_0 = arith.constant 0 : i32
    %c0_i32_1 = arith.constant 0 : i32
    return %c0_i32, %c0_i32_0 : i32, i32
  }
  func.func @transform_2(%arg0: i32) -> (i32, i32) {
    %c0_i32 = arith.constant 0 : i32
    %c0_i32_0 = arith.constant 0 : i32
    %c0_i32_1 = arith.constant 0 : i32
    return %c0_i32, %c0_i32_0 : i32, i32
  }
  func.func @transform_3(%arg0: i32) -> (i32, i32) {
    %c0_i32 = arith.constant 0 : i32
    %c0_i32_0 = arith.constant 0 : i32
    %c0_i32_1 = arith.constant 0 : i32
    return %c0_i32, %c0_i32_0 : i32, i32
  }
  func.func @transform_4(%arg0: i32) -> (i32, i32) {
    %c0_i32 = arith.constant 0 : i32
    %c0_i32_0 = arith.constant 0 : i32
    %c0_i32_1 = arith.constant 0 : i32
    return %c0_i32, %c0_i32_0 : i32, i32
  }
  func.func @transform_5(%arg0: i32) -> (i32, i32) {
    %c0_i32 = arith.constant 0 : i32
    %c0_i32_0 = arith.constant 0 : i32
    %c0_i32_1 = arith.constant 0 : i32
    return %c0_i32, %c0_i32_0 : i32, i32
  }
  func.func @transform_6(%arg0: i32) -> (i32, i32) {
    %c0_i32 = arith.constant 0 : i32
    %c0_i32_0 = arith.constant 0 : i32
    %c0_i32_1 = arith.constant 0 : i32
    return %c0_i32, %c0_i32_0 : i32, i32
  }
  func.func @transform_7(%arg0: i32) -> (i32, i32) {
    %c0_i32 = arith.constant 0 : i32
    %c0_i32_0 = arith.constant 0 : i32
    %c0_i32_1 = arith.constant 0 : i32
    return %c0_i32, %c0_i32_0 : i32, i32
  }
  func.func @transform_8(%arg0: i32) -> (i32, i32) {
    %c0_i32 = arith.constant 0 : i32
    %c0_i32_0 = arith.constant 0 : i32
    %c0_i32_1 = arith.constant 0 : i32
    return %c0_i32, %c0_i32_0 : i32, i32
  }
  func.func @transform_9(%arg0: i32) -> (i32, i32) {
    %c0_i32 = arith.constant 0 : i32
    %c0_i32_0 = arith.constant 0 : i32
    return %c0_i32, %arg0 : i32, i32
  }
}

</mosaic_0001>

<bundles_post_ra>
// kernel: tpu_custom_call.1
= control target key start
LH: loop header
LB: loop body
LE: loop exit
PB: predicated region body
PF: predicated region fallthrough
CT: control target
= control target key end

     0   :  { %vm86_vm0 = vcmask 1040384   ;;  %v595_v2 = vmov 0.0|0.0   ;;  %vm596_vm1 = vmmov 1   ;;  %vm597_vm3 = vmmov 0   ;;  %s757_s0 = inlined_call_operand.vmem [shape: f32[9,8], index: 0, kind: input, shape index: {}]   ;;  %s758_s1 = inlined_call_operand.vmem [shape: f32[40,9], index: 1, kind: input, shape index: {}]   ;;  %s759_s2 = inlined_call_operand.vmem [shape: f32[40,1], index: 2, kind: input, shape index: {}]   ;;  %s760_s3 = inlined_call_operand.vmem [shape: f32[16,16], index: 3, kind: input, shape index: {}]   ;;  %s761_s4 = inlined_call_operand.vmem [shape: f32[16,1], index: 4, kind: input, shape index: {}]   ;;  %s762_s5 = inlined_call_operand.vmem [shape: f32[8,16], index: 5, kind: input, shape index: {}]   ;;  %s763_s6 = inlined_call_operand.vmem [shape: f32[8,1], index: 6, kind: input, shape index: {}]   ;;  %s764_s7 = inlined_call_operand.vmem [shape: f32[4,8], index: 7, kind: input, shape index: {}]   ;;  %s765_s8 = inlined_call_operand.vmem [shape: f32[4,1], index: 8, kind: input, shape index: {}]   ;;  %s766_s9 = inlined_call_operand.hbm [shape: f32[4,8], index: 9, kind: output, shape index: {}]  }
   0x1   :  { %v33_v0 = vld [vmem:[%s757_s0] sm:$0xff]  ;;  %v34_v1 = vld [vmem:[%s757_s0 + $0x8] sm:$0x1]  ;;  %548 = vmatprep.subr.bf16.mxu0 %v595_v2  ;;  %559 = vmatprep.subr.bf16.mxu1 %v595_v2  ;;  %vm550_vm2 = vmpackc.low %vm86_vm0, %vm596_vm1  ;;  %v598_v4 = vmov 0.0   ;;  %vm70_vm4 = vcmask 72704   ;;  %v599_v9 = vmov 0  }
   0x2   :  { %v549_v3 = vpack.c.bf16 %v34_v1, %v33_v0  ;;  %514 = vmatprep.mubr.msk.f32.mxu0 %vm597_vm3, %v598_v4  ;;  %526 = vmatprep.mubr.msk.f32.mxu1 %vm597_vm3, %v598_v4  ;;  %v35_v5 = vld [vmem:[%s758_s1] sm:$0xff]  ;;  %v43_v7 = vld [vmem:[%s759_s2 + $0x18] sm:$0xff]  ;;  %v41_v8 = vld [vmem:[%s759_s2 + $0x8] sm:$0xff] }
   0x3   :  { %v39_v6 = vld [vmem:[%s758_s1 + $0x20] sm:$0xff]  ;;  %569 = vset.pattern.permute.xlu0 %v599_v9  ;;  %570 = vset.pattern.permute.xlu1 %v599_v9 }
   0x4   :  { %551 = vmatpush3.bf16.msk.msra.mxu0 %vm550_vm2, %v549_v3  ;;  %560 = vmatpush3.bf16.msk.msra.mxu1 %vm550_vm2, %v549_v3 }
   0x5   :  { %14 = vsyncpa [#allocation3], 0  ;;  %62 = vperm.xlu0 %569, %v43_v7   ;;  %52 = vperm.xlu1 %570, %v41_v8   ;;  %v44_v10 = vld [vmem:[%s759_s2 + $0x20] sm:$0xff]  ;;  %v42_v11 = vld [vmem:[%s759_s2 + $0x10] sm:$0xff]  ;;  %s600_s30 = smov 8   ;;  %vm215_vm5 = vcmask 130048  }
   0x6   :  { %v36_v12 = vld [vmem:[%s758_s1 + $0x8] sm:$0xff]  ;;  %v37_v13 = vld [vmem:[%s758_s1 + $0x10] sm:$0xff]  ;;  %v38_v14 = vld [vmem:[%s758_s1 + $0x18] sm:$0xff]  ;;  %vm188_vm6 = vcmask 64512   ;;  %s602_s21 = smov [#allocation2]   ;;  %vm468_vm12 = vcmask 60416  }
   0x7   :  { %515 = vmatmul.mubr.msk.f32.vlgmr.msra.gmra.mrb[0].mxu0 %vm70_vm4, %v35_v5  ;;  %527 = vmatmul.mubr.msk.f32.vlgmr.msra.gmra.mrb[0].mxu1 %vm70_vm4, %v39_v6  ;;  %v194_v23 = vld [vmem:[%s761_s4 + $0x8] sm:$0xff]  ;;  %v198_v26 = vld [vmem:[%s765_s8] sm:$0xf]  ;;  %s476_s22 = sshll.u32 %s602_s21, 4  ;;  %s477_s22 = int_to_ptr.vmem [resolvable:$true] %s476_s22 }
   0x8   :  { %517 = vmatprep.mubr.msk.f32.mxu0 %vm597_vm3, %v598_v4  ;;  %v191_v28 = vld [vmem:[%s760_s3] sm:$0xff]  ;;  %v192_v48 = vld [vmem:[%s760_s3 + $0x8] sm:$0xff]  ;;  %p576_p1 = scmp.lt.s32.totalorder %s477_s22, %s477_s22 }
   0x9   :  { %67 = vperm.xlu0 %569, %v44_v10   ;;  %57 = vperm.xlu1 %570, %v42_v11   ;;  %v193_v32 = vld [vmem:[%s761_s4] sm:$0xff] }
   0xa   :  { %533 = vmatprep.mubr.msk.f32.mxu1 %vm215_vm5, %v191_v28  ;;  %v196_v33 = vld [vmem:[%s763_s6] sm:$0xff] }
   0xb   :  { %518 = vmatmul.mubr.msk.f32.gmra.mrb[2].mxu0 %vm70_vm4, %v36_v12  ;;  %v40_v34 = vld [vmem:[%s759_s2] sm:$0xff] }
   0xc   :  { %520 = vmatprep.mubr.msk.f32.mxu0 %vm597_vm3, %v598_v4  ;;  %v195_v60 = vld [vmem:[%s762_s5] sm:$0xff]  ;;  %s601_s5 = smov 120  }
   0xf   :  { %521 = vmatmul.mubr.msk.f32.gmra.mrb[4].mxu0 %vm70_vm4, %v37_v13 }
  0x10   :  { %523 = vmatprep.mubr.msk.f32.mxu0 %vm597_vm3, %v598_v4 }
  0x13   :  { %524 = vmatmul.mubr.msk.f32.gmra.mrb[6].mxu0 %vm70_vm4, %v38_v14 }
  0x84   :  { %v63_v15 = vpop.permute.xlu0 %62  ;;  %v53_v35 = vpop.permute.xlu1 %52 }
  0x88   :  { %v68_v16 = vpop.permute.xlu0 %67  ;;  %v58_v36 = vpop.permute.xlu1 %57 }
  0xda   :  { %v703_v17 = vpop.f32.mrb[0].mxu0  ;;  %v176_v18 = vpop.f32.mrb[0].mxu1 }
  0xdb   :  { %v177_v19 = vadd.f32 %v176_v18, %v68_v16  ;;  %v516_v20 = vpop.f32.mrb[1].mxu0  ;;  %v528_v21 = vpop.f32.mrb[1].mxu1 }
  0xdd   :  { %184 = vrot.lane.b32.xlu1 %v177_v19, %s600_s30 }
  0xde   :  { %v161_v22 = vpop.f32.mrb[2].mxu0 }
  0xdf   :  { %v519_v24 = vpop.f32.mrb[3].mxu0  ;;  %v162_v40 = vadd.f32 %v161_v22, %v53_v35 }
  0xe1   :  { %212 = vperm.xlu1 %570, %v194_v23  }
  0xe2   :  { %v166_v25 = vpop.f32.mrb[4].mxu0 }
  0xe3   :  { %v522_v27 = vpop.f32.mrb[5].mxu0  ;;  %v167_v38 = vadd.f32 %v166_v25, %v58_v36 }
  0xe5   :  { %386 = vperm.xlu1 %570, %v198_v26  }
  0xe6   :  { %v171_v29 = vpop.f32.mrb[6].mxu0 }
  0xe7   :  { %v172_v30 = vadd.f32 %v171_v29, %v63_v15  ;;  %v525_v31 = vpop.f32.mrb[7].mxu0 }
  0xe9   :  { %182 = vrot.lane.b32.xlu0 %v172_v30, %s600_s30 }
  0xed   :  { %207 = vperm.xlu0 %569, %v193_v32  }
  0xf1   :  { %305 = vperm.xlu0 %569, %v196_v33  }
  0xf5   :  { %47 = vperm.xlu0 %569, %v40_v34  }
 0x14f   :  { %v185_v37 = vpop.permute.xlu1 %184 }
 0x150   :  { %v190_v39 = vsel %vm188_vm6, %v167_v38, %v185_v37 }
 0x151   :  { %v202_v41 = vmul.f32 0.01, %v190_v39  ;;  %vm200_vm7 = vcmp.gt.f32.partialorder %v190_v39, 0.0 }
 0x153   :  { %v204_v45 = vsel %vm200_vm7, %v190_v39, %v202_v41 }
 0x15b   :  { %v183_v42 = vpop.permute.xlu0 %182 }
 0x15c   :  { %v189_v43 = vsel %vm188_vm6, %v162_v40, %v183_v42 }
 0x15d   :  { %vm199_vm8 = vcmp.gt.f32.partialorder %v189_v43, 0.0  ;;  %v201_v44 = vmul.f32 0.01, %v189_v43 }
 0x15f   :  { %v203_v46 = vsel %vm199_vm8, %v189_v43, %v201_v44 }
 0x160   :  { %v552_v47 = vpack.c.bf16 %v204_v45, %v203_v46  ;;  %v213_v49 = vpop.permute.xlu1 %212 }
 0x162   :  { %553 = vmatprep.subr.bf16.mxu1 %v552_v47 }
 0x163   :  { %555 = vmatpush3.bf16.msra.mxu1 %v552_v47 }
 0x164   :  { %556 = vmatprep.subr.bf16.mxu1 %v595_v2  ;;  %v197_v2 = vld [vmem:[%s764_s7] sm:$0xf]  ;;  %v387_v6 = vpop.permute.xlu1 %386  ;;  %s571_s7 = scalar_lea.vmem %s477_s22, 64 }
 0x165   :  { %p572_p0 = scmp.ne.s32.totalorder %s477_s22, %s571_s7  ;;  %p577_p2 = scmp.lt.s32.totalorder %s571_s7, %s571_s7 }
 0x166   :  { %534 = vmatmul.mubr.msk.f32.vlgmr.msra.gmra.mrb[2].mxu1 %vm215_vm5, %v192_v48 }
 0x167   :  { %540 = vmatprep.mubr.msk.f32.mxu1 %vm597_vm3, %v598_v4  ;;  %p578_p3 = por %p577_p2, %p576_p1 }
 0x169   :  { %p579_p4 = pnand %p578_p3, %p572_p0 }
 0x16c   :  { %v208_v51 = vpop.permute.xlu0 %207 }
 0x170   :  { %v306_v61 = vpop.permute.xlu0 %305 }
 0x174   :  { %v48_v5 = vpop.permute.xlu0 %47 }
 0x175   :  { %v157_v8 = vadd.f32 %v703_v17, %v48_v5 }
 0x239   :  { %v535_v50 = vpop.f32.mrb[2].mxu1 }
 0x23a   :  { %v294_v52 = vadd.f32 %v535_v50, %v213_v49  ;;  %v288_v53 = vpop.f32.mrb[3].mxu1 }
 0x23b   :  { %v289_v54 = vadd.f32 %v288_v53, %v208_v51 }
 0x23c   :  { %vm298_vm9 = vcmp.gt.f32.partialorder %v294_v52, 0.0  ;;  %v300_v55 = vmul.f32 0.01, %v294_v52 }
 0x23d   :  { %vm297_vm10 = vcmp.gt.f32.partialorder %v289_v54, 0.0  ;;  %v299_v56 = vmul.f32 0.01, %v289_v54 }
 0x23e   :  { %v302_v57 = vsel %vm298_vm9, %v294_v52, %v300_v55 }
 0x23f   :  { %v301_v58 = vsel %vm297_vm10, %v289_v54, %v299_v56 }
 0x240   :  { %v557_v59 = vpack.c.bf16 %v302_v57, %v301_v58 }
 0x242   :  { %558 = vmatpush3.bf16.msra.mxu1 %v557_v59 }
 0x243   :  { %543 = vmatprep.subr.mxu1 %v598_v4 }
 0x245   :  { %541 = vmatmul.mubr.msk.f32.vlgmr.msra.gmra.mrb[4].mxu1 %vm215_vm5, %v195_v60 }
 0x246   :  { %545 = vmatprep.mubr.msk.f32.mxu1 %vm597_vm3, %v598_v4 }
 0x318   :  { %v377_v62 = vpop.f32.mrb[4].mxu1 }
 0x319   :  { %v378_v63 = vadd.f32 %v377_v62, %v306_v61  ;;  %v542_v0 = vpop.f32.mrb[5].mxu1 }
 0x31b   :  { %vm381_vm11 = vcmp.gt.f32.partialorder %v378_v63, 0.0  ;;  %v382_v1 = vmul.f32 0.01, %v378_v63 }
 0x31d   :  { %v383_v3 = vsel %vm381_vm11, %v378_v63, %v382_v1 }
 0x31e   :  { %544 = vmatpush3.msra.mxu1 %v383_v3 }
 0x31f   :  { %546 = vmatmul.mubr.msk.f32.vlgmr.msra.gmra.mrb[6].mxu1 %vm188_vm6, %v197_v2 }
 0x3f2   :  { %v458_v7 = vpop.f32.mrb[6].mxu1 }
 0x3f3   :  { %v459_v4 = vadd.f32 %v458_v7, %v387_v6  ;;  %v547_v9 = vpop.f32.mrb[7].mxu1 }
 0x3f5   :  { %464 = vrot.lane.b32.xlu1 %v459_v4, %s601_s5  ;;  %v462_v10 = vadd.f32 %v459_v4, %v157_v8 }
 0x467   :  { %v465_v11 = vpop.permute.xlu1 %464 }
 0x468   :  { %v467_v12 = vsub.f32 %v462_v10, %v465_v11 }
 0x46a   :  { %469 = vst.msk [vmem:[#allocation2] sm:$0xf] %vm468_vm12, %v467_v12 }
 0x46b   :  { %582 = shalt.err (!%p579_p4)
}
 0x46c   :  { %s583_s25 = scalar_lea.hbm %s766_s9, 64 }
 0x46d   :  { %p584_p5 = scmp.ne.s32.totalorder %s766_s9, %s583_s25  ;;  %p587_p6 = scmp.lt.u32.totalorder %s583_s25, %s766_s9 }
 0x46f   :  { %p589_p7 = pnand %p587_p6, %p584_p5 }
 0x471   :  { %592 = shalt.err (!%p589_p7)
}
 0x472   :  { %479 = dma.vmem_to_hbm [thread:$0]  %s477_s22, 64, %s766_s9, [#allocation3]  }
 0x473   :  { %593 = dma.done.wait [#allocation3], 64  }
 0x474   :  { %594 = vsyncadd [#allocation3], 4294967232 }
 0x475   :  { %483 = vsyncpa [#allocation3], 1 }

</bundles_post_ra>
